<compile_context>
chip_gen: v7x
topology: tpu7x:2x2x1
jax: 0.10.0
libtpu: 0.0.40
codegen_flags: <defaults>
</compile_context>

<pallas_src>
import jax
import jax.numpy as jnp
from jax.experimental import pallas as pl
from jax.experimental.pallas import tpu as pltpu


def _cdiv(a, b):
    return (a + b - 1) // b


def _linear_kernel(x_ref, w_ref, b_ref, o_ref):
    # Single K block: one MXU matmul + bias epilogue, f32 accumulation.
    acc = jnp.dot(x_ref[...], w_ref[...], preferred_element_type=jnp.float32)
    o_ref[...] = (acc + b_ref[...].astype(jnp.float32)).astype(o_ref.dtype)


def _linear_kernel_ktiled(x_ref, w_ref, b_ref, o_ref, acc_ref):
    # K (d_model) is tiled: accumulate partial products in a VMEM f32 scratch.
    @pl.when(pl.program_id(1) == 0)
    def _init():
        acc_ref[...] = jnp.zeros_like(acc_ref)

    acc_ref[...] += jnp.dot(x_ref[...], w_ref[...],
                            preferred_element_type=jnp.float32)

    @pl.when(pl.program_id(1) == pl.num_programs(1) - 1)
    def _finalize():
        o_ref[...] = (acc_ref[...] + b_ref[...].astype(jnp.float32)
                      ).astype(o_ref.dtype)


def _vmem_limit_bytes():
    try:
        cap = int(pltpu.get_tpu_info().vmem_capacity_bytes)
    except Exception:
        cap = 64 * 1024 * 1024          # conservative (v7x-sized) fallback
    # Leave headroom for Mosaic's own scratch; cap at 100 MiB (v5e/v6e).
    return int(min(max(cap * 3 // 4, 32 * 1024 * 1024), 100 * 1024 * 1024))


def decoder_forward(x, w, b, *, target_step_bytes=4 * 1024 * 1024):
    """x: (N, L, d_model); w: (d_model, c_out); b: (c_out,) -> (N, L, c_out)."""
    N, L, d_model = x.shape
    c_out = w.shape[1]
    rows = N * L

    itemsize = jnp.dtype(x.dtype).itemsize
    sublane = 8 * max(1, 4 // itemsize)      # f32: 8, bf16: 16, int8/fp8: 32

    # ---- K (d_model) tiling: only for large hidden sizes, and only with a
    # tile that divides d_model exactly (keeps the kernel padding-free).
    tile_k = d_model
    if d_model > 2048:
        for cand in (1024, 512, 256, 128):
            if d_model % cand == 0:
                tile_k = cand
                break
    k_tiles = _cdiv(d_model, tile_k)

    vmem_limit = _vmem_limit_bytes()
    budget = vmem_limit // 2                 # tiles + weights use at most half

    # ---- Row tile: sized from an HBM byte budget per step (amortize the
    # ~0.35us per-grid-step overhead), then clamped by the VMEM budget.
    per_row_hbm = (d_model + c_out) * itemsize
    tile_rows = max(sublane, target_step_bytes // per_row_hbm)

    w_bufs = 1 if k_tiles == 1 else 2
    resident_w = w_bufs * tile_k * c_out * itemsize + 2 * c_out * itemsize
    per_row_vmem = (2 * tile_k * itemsize                     # x (double-buf)
                    + 2 * c_out * itemsize                    # out (double-buf)
                    + (4 * c_out if k_tiles > 1 else 0))      # f32 accumulator
    vmem_rows = max(sublane, (budget - resident_w) // per_row_vmem)
    tile_rows = min(tile_rows, vmem_rows)

    # Keep >= 4 row tiles (v7x megacore split), but only when each of the 4
    # tiles still moves >= 2 MiB of HBM traffic (don't ruin amortization).
    four_way = _cdiv(rows, 4)
    if four_way * per_row_hbm >= 2 * 1024 * 1024:
        tile_rows = min(tile_rows, four_way)

    if tile_rows >= rows:
        tile_rows = rows                     # single full-extent block
    else:
        tile_rows = max(sublane, (tile_rows // sublane) * sublane)
    row_tiles = _cdiv(rows, tile_rows)

    x2d = x.reshape(rows, d_model)           # free reshape (contiguous)
    b2d = b.reshape(1, c_out)

    cost = pl.CostEstimate(
        flops=2 * rows * d_model * c_out,
        transcendentals=0,
        bytes_accessed=int(itemsize * (rows * d_model + d_model * c_out
                                       + c_out + rows * c_out)),
    )

    def build(single_buffer_resident):
        resident_mode = pl.Buffered(1) if single_buffer_resident else None
        if k_tiles == 1:
            grid = (row_tiles,)
            in_specs = [
                # x: one row-tile per grid step.
                pl.BlockSpec((tile_rows, d_model), lambda i: (i, 0)),
                # W, b: constant block index -> fetched once, stay resident;
                # single-buffered to save VMEM.
                pl.BlockSpec((d_model, c_out), lambda i: (0, 0),
                             pipeline_mode=resident_mode),
                pl.BlockSpec((1, c_out), lambda i: (0, 0),
                             pipeline_mode=resident_mode),
            ]
            out_specs = pl.BlockSpec((tile_rows, c_out), lambda i: (i, 0))
            kernel = _linear_kernel
            scratch = ()
            dims = ("parallel",)
        else:
            grid = (row_tiles, k_tiles)      # reduction axis last
            in_specs = [
                pl.BlockSpec((tile_rows, tile_k), lambda i, k: (i, k)),
                pl.BlockSpec((tile_k, c_out), lambda i, k: (k, 0)),
                pl.BlockSpec((1, c_out), lambda i, k: (0, 0),
                             pipeline_mode=resident_mode),
            ]
            out_specs = pl.BlockSpec((tile_rows, c_out), lambda i, k: (i, 0))
            kernel = _linear_kernel_ktiled
            scratch = [pltpu.VMEM((tile_rows, c_out), jnp.float32)]
            dims = ("parallel", "arbitrary")
        return pl.pallas_call(
            kernel,
            out_shape=jax.ShapeDtypeStruct((rows, c_out), x.dtype),
            grid=grid,
            in_specs=in_specs,
            out_specs=out_specs,
            scratch_shapes=scratch,
            compiler_params=pltpu.CompilerParams(
                dimension_semantics=dims,
                vmem_limit_bytes=vmem_limit,
            ),
            cost_estimate=cost,
        )

    try:
        out2d = build(True)(x2d, w, b2d)
    except Exception:
        # Fallback if this jax build rejects pipeline_mode=pl.Buffered(1).
        out2d = build(False)(x2d, w, b2d)

    return out2d.reshape(N, L, c_out)


if __name__ == "__main__":
    # Small shapes consistent with the module's forward contract:
    # x : N x L x C(=d_model), output: N x L x c_out.
    N, L, d_model, c_out = 2, 8, 32, 16

    key = jax.random.PRNGKey(0)
    kx, kw = jax.random.split(key)

    x = jax.random.normal(kx, (N, L, d_model), dtype=jnp.float32)
    # init_type='normal' -> normal(0, 0.02) weights, zero bias (deterministic).
    w = 0.02 * jax.random.normal(kw, (d_model, c_out), dtype=jnp.float32)
    b = jnp.zeros((c_out,), dtype=jnp.float32)

    out = decoder_forward(x, w, b)
    jax.block_until_ready(out)

    # Sanity check against plain JAX reference.
    ref = x @ w + b
    assert out.shape == (N, L, c_out)
    assert jnp.allclose(out, ref, atol=1e-5, rtol=1e-5)

    print("KERNEL_OK")
</pallas_src>

<mosaic_0001>
module attributes {stable_mosaic.version = 11 : i64} {
  func.func @_linear_kernel(%arg0: i32, %arg1: memref<16x32xf32, #tpu.memory_space<vmem>>, %arg2: memref<32x16xf32, #tpu.memory_space<vmem>>, %arg3: memref<1x16xf32, #tpu.memory_space<vmem>>, %arg4: memref<16x16xf32, #tpu.memory_space<vmem>>) attributes {dimension_semantics = [#tpu.dimension_semantics<parallel>], iteration_bounds = array<i64: 1>, scalar_prefetch = 0 : i64, scratch_operands = 0 : i64, tpu.core_type = #tpu.core_type<tc>, window_params = [{transform_indices = @transform_0, window_bounds = array<i64: 16, 32>}, {pipeline_mode = #tpu.pipeline_mode<synchronous>, transform_indices = @transform_1, window_bounds = array<i64: 32, 16>}, {pipeline_mode = #tpu.pipeline_mode<synchronous>, transform_indices = @transform_2, window_bounds = array<i64: 1, 16>}, {transform_indices = @transform_3, window_bounds = array<i64: 16, 16>}]} {
    %c0 = arith.constant 0 : index
    %c0_0 = arith.constant 0 : index
    %0 = vector.load %arg1[%c0, %c0_0] : memref<16x32xf32, #tpu.memory_space<vmem>>, vector<16x32xf32>
    %c0_1 = arith.constant 0 : index
    %c0_2 = arith.constant 0 : index
    %1 = vector.load %arg2[%c0_1, %c0_2] : memref<32x16xf32, #tpu.memory_space<vmem>>, vector<32x16xf32>
    %cst = arith.constant dense<0.000000e+00> : vector<16x16xf32>
    %2 = tpu.matmul %0, %1, %cst {dimension_numbers = #tpu.dot_dimension_numbers<[1], [0], [0], [1], [0, 0, 1, 1], [], []>} : vector<16x32xf32>, vector<32x16xf32>, vector<16x16xf32> -> vector<16x16xf32>
    %c0_3 = arith.constant 0 : index
    %c0_4 = arith.constant 0 : index
    %3 = vector.load %arg3[%c0_3, %c0_4] : memref<1x16xf32, #tpu.memory_space<vmem>>, vector<1x16xf32>
    %4 = vector.broadcast %3 : vector<1x16xf32> to vector<16x16xf32>
    %5 = arith.addf %2, %4 : vector<16x16xf32>
    %c0_5 = arith.constant 0 : index
    %c0_6 = arith.constant 0 : index
    %6 = vector.load %arg4[%c0_5, %c0_6] : memref<16x16xf32, #tpu.memory_space<vmem>>, vector<16x16xf32>
    tpu.vector_store %arg4[%c0_5, %c0_6], %5 {strides = array<i32>} : memref<16x16xf32, #tpu.memory_space<vmem>>, vector<16x16xf32>,
    return
  }
  func.func @transform_0(%arg0: i32) -> (i32, i32) {
    %c0_i32 = arith.constant 0 : i32
    %c0_i32_0 = arith.constant 0 : i32
    return %arg0, %c0_i32 : i32, i32
  }
  func.func @transform_1(%arg0: i32) -> (i32, i32) {
    %c0_i32 = arith.constant 0 : i32
    %c0_i32_0 = arith.constant 0 : i32
    %c0_i32_1 = arith.constant 0 : i32
    return %c0_i32, %c0_i32_0 : i32, i32
  }
  func.func @transform_2(%arg0: i32) -> (i32, i32) {
    %c0_i32 = arith.constant 0 : i32
    %c0_i32_0 = arith.constant 0 : i32
    %c0_i32_1 = arith.constant 0 : i32
    return %c0_i32, %c0_i32_0 : i32, i32
  }
  func.func @transform_3(%arg0: i32) -> (i32, i32) {
    %c0_i32 = arith.constant 0 : i32
    %c0_i32_0 = arith.constant 0 : i32
    return %arg0, %c0_i32 : i32, i32
  }
}

module attributes {stable_mosaic.version = 11 : i64} {
  func.func @_linear_kernel(%arg0: i32, %arg1: memref<16x32xf32, #tpu.memory_space<vmem>>, %arg2: memref<32x16xf32, #tpu.memory_space<vmem>>, %arg3: memref<1x16xf32, #tpu.memory_space<vmem>>, %arg4: memref<16x16xf32, #tpu.memory_space<vmem>>) attributes {dimension_semantics = [#tpu.dimension_semantics<parallel>], iteration_bounds = array<i64: 1>, scalar_prefetch = 0 : i64, scratch_operands = 0 : i64, tpu.core_type = #tpu.core_type<tc>, window_params = [{transform_indices = @transform_0, window_bounds = array<i64: 16, 32>}, {pipeline_mode = #tpu.pipeline_mode<synchronous>, transform_indices = @transform_1, window_bounds = array<i64: 32, 16>}, {pipeline_mode = #tpu.pipeline_mode<synchronous>, transform_indices = @transform_2, window_bounds = array<i64: 1, 16>}, {transform_indices = @transform_3, window_bounds = array<i64: 16, 16>}]} {
    %c0 = arith.constant 0 : index
    %c0_0 = arith.constant 0 : index
    %0 = vector.load %arg1[%c0, %c0_0] : memref<16x32xf32, #tpu.memory_space<vmem>>, vector<16x32xf32>
    %c0_1 = arith.constant 0 : index
    %c0_2 = arith.constant 0 : index
    %1 = vector.load %arg2[%c0_1, %c0_2] : memref<32x16xf32, #tpu.memory_space<vmem>>, vector<32x16xf32>
    %cst = arith.constant dense<0.000000e+00> : vector<16x16xf32>
    %2 = tpu.matmul %0, %1, %cst {dimension_numbers = #tpu.dot_dimension_numbers<[1], [0], [0], [1], [0, 0, 1, 1], [], []>} : vector<16x32xf32>, vector<32x16xf32>, vector<16x16xf32> -> vector<16x16xf32>
    %c0_3 = arith.constant 0 : index
    %c0_4 = arith.constant 0 : index
    %3 = vector.load %arg3[%c0_3, %c0_4] : memref<1x16xf32, #tpu.memory_space<vmem>>, vector<1x16xf32>
    %4 = vector.broadcast %3 : vector<1x16xf32> to vector<16x16xf32>
    %5 = arith.addf %2, %4 : vector<16x16xf32>
    %c0_5 = arith.constant 0 : index
    %c0_6 = arith.constant 0 : index
    %6 = vector.load %arg4[%c0_5, %c0_6] : memref<16x16xf32, #tpu.memory_space<vmem>>, vector<16x16xf32>
    tpu.vector_store %arg4[%c0_5, %c0_6], %5 {strides = array<i32>} : memref<16x16xf32, #tpu.memory_space<vmem>>, vector<16x16xf32>,
    return
  }
  func.func @transform_0(%arg0: i32) -> (i32, i32) {
    %c0_i32 = arith.constant 0 : i32
    %c0_i32_0 = arith.constant 0 : i32
    return %arg0, %c0_i32 : i32, i32
  }
  func.func @transform_1(%arg0: i32) -> (i32, i32) {
    %c0_i32 = arith.constant 0 : i32
    %c0_i32_0 = arith.constant 0 : i32
    %c0_i32_1 = arith.constant 0 : i32
    return %c0_i32, %c0_i32_0 : i32, i32
  }
  func.func @transform_2(%arg0: i32) -> (i32, i32) {
    %c0_i32 = arith.constant 0 : i32
    %c0_i32_0 = arith.constant 0 : i32
    %c0_i32_1 = arith.constant 0 : i32
    return %c0_i32, %c0_i32_0 : i32, i32
  }
  func.func @transform_3(%arg0: i32) -> (i32, i32) {
    %c0_i32 = arith.constant 0 : i32
    %c0_i32_0 = arith.constant 0 : i32
    return %arg0, %c0_i32 : i32, i32
  }
}

</mosaic_0001>

<bundles_post_ra>
// kernel: tpu_custom_call.1
= control target key start
LH: loop header
LB: loop body
LE: loop exit
PB: predicated region body
PF: predicated region fallthrough
CT: control target
= control target key end

     0   :  { %vm28_vm0 = vcmask 261120   ;;  %s240_s0 = inlined_call_operand.vmem [shape: f32[16,32], index: 0, kind: input, shape index: {}]   ;;  %s241_s1 = inlined_call_operand.vmem [shape: f32[32,16], index: 1, kind: input, shape index: {}]   ;;  %s242_s2 = inlined_call_operand.vmem [shape: f32[1,16], index: 2, kind: input, shape index: {}]   ;;  %s243_s3 = inlined_call_operand.hbm [shape: f32[16,16], index: 3, kind: output, shape index: {}]  }
   0x1   :  { %v17_v0 = vld [vmem:[%s241_s1] sm:$0xff]  ;;  %v18_v1 = vld [vmem:[%s241_s1 + $0x8] sm:$0xff]  ;;  %v19_v2 = vld [vmem:[%s241_s1 + $0x10] sm:$0xff] }
   0x2   :  { %v149_v3 = vpack.c.bf16 %v18_v1, %v17_v0  ;;  %v20_v4 = vld [vmem:[%s241_s1 + $0x18] sm:$0xff]  ;;  %v15_v5 = vld [vmem:[%s240_s0] sm:$0xff] }
   0x3   :  { %v153_v6 = vpack.c.bf16 %v20_v4, %v19_v2  ;;  %146 = vmatprep.mubr.msk.f32.mxu0 %vm28_vm0, %v15_v5 }
   0x4   :  { %8 = vsyncpa [#allocation3], 0  ;;  %150 = vmatprep.subr.bf16.mxu0 %v149_v3  ;;  %v16_v7 = vld [vmem:[%s240_s0 + $0x8] sm:$0xff]  ;;  %v129_v8 = vld [vmem:[%s242_s2] ss:$0 sm:$0xff]  ;;  %s184_s1 = smov [#allocation2]  }
   0x5   :  { %152 = vmatpush3.bf16.msra.mxu0 %v149_v3  ;;  %s118_s26 = sshll.u32 %s184_s1, 4  ;;  %vm110_vm1 = vcmask 130048   ;;  %s119_s26 = int_to_ptr.vmem [resolvable:$true] %s118_s26 }
   0x6   :  { %154 = vmatprep.subr.bf16.mxu0 %v153_v6  ;;  %s160_s27 = scalar_lea.vmem %s119_s26, 256  ;;  %p165_p1 = scmp.lt.s32.totalorder %s119_s26, %s119_s26 }
   0x7   :  { %p161_p0 = scmp.ne.s32.totalorder %s119_s26, %s160_s27  ;;  %p166_p2 = scmp.lt.s32.totalorder %s160_s27, %s160_s27 }
   0x9   :  { %156 = vmatpush3.bf16.msra.mxu0 %v153_v6  ;;  %p167_p3 = por %p166_p2, %p165_p1 }
   0xb   :  { %p168_p4 = pnand %p167_p3, %p161_p0 }
   0xc   :  { %147 = vmatmul.mubr.msk.f32.vlgmr.msra.gmra.mrb[0].mxu0 %vm28_vm0, %v16_v7 }
  0xdf   :  { %v148_v9 = vpop.f32.mrb[0].mxu0 }
  0xe0   :  { %v107_v10 = vadd.f32 %v148_v9, %v129_v8  ;;  %v101_v11 = vpop.f32.mrb[1].mxu0 }
  0xe1   :  { %v102_v12 = vadd.f32 %v129_v8, %v101_v11 }
  0xe2   :  { %112 = vst.msk [vmem:[#allocation2 + $0x8] sm:$0xff] %vm110_vm1, %v107_v10 }
  0xe3   :  { %111 = vst.msk [vmem:[#allocation2] sm:$0xff] %vm110_vm1, %v102_v12 }
  0xe4   :  { %171 = shalt.err (!%p168_p4)
}
  0xe5   :  { %s172_s2 = scalar_lea.hbm %s243_s3, 256 }
  0xe6   :  { %p173_p5 = scmp.ne.s32.totalorder %s243_s3, %s172_s2  ;;  %p176_p6 = scmp.lt.u32.totalorder %s172_s2, %s243_s3 }
  0xe8   :  { %p178_p7 = pnand %p176_p6, %p173_p5 }
  0xea   :  { %181 = shalt.err (!%p178_p7)
}
  0xeb   :  { %s185_s6 = smov 128   ;;  %s186_s7 = smov 8  }
  0xec   :  { %124 = dma.vmem_to_hbm [thread:$0]  %s119_s26, 256, %s243_s3, [#allocation3], %s185_s6, %s185_s6, %s186_s7  }
  0xed   :  { %182 = dma.done.wait [#allocation3], 256  }
  0xee   :  { %183 = vsyncadd [#allocation3], 4294967040 }
  0xef   :  { %128 = vsyncpa [#allocation3], 1 }

// kernel: tpu_custom_call.1
= control target key start
LH: loop header
LB: loop body
LE: loop exit
PB: predicated region body
PF: predicated region fallthrough
CT: control target
= control target key end

     0   :  { %vm28_vm0 = vcmask 261120   ;;  %s240_s0 = inlined_call_operand.vmem [shape: f32[16,32], index: 0, kind: input, shape index: {}]   ;;  %s241_s1 = inlined_call_operand.vmem [shape: f32[32,16], index: 1, kind: input, shape index: {}]   ;;  %s242_s2 = inlined_call_operand.vmem [shape: f32[1,16], index: 2, kind: input, shape index: {}]   ;;  %s243_s3 = inlined_call_operand.hbm [shape: f32[16,16], index: 3, kind: output, shape index: {}]  }
   0x1   :  { %v17_v0 = vld [vmem:[%s241_s1] sm:$0xff]  ;;  %v18_v1 = vld [vmem:[%s241_s1 + $0x8] sm:$0xff]  ;;  %v19_v2 = vld [vmem:[%s241_s1 + $0x10] sm:$0xff] }
   0x2   :  { %v149_v3 = vpack.c.bf16 %v18_v1, %v17_v0  ;;  %v20_v4 = vld [vmem:[%s241_s1 + $0x18] sm:$0xff]  ;;  %v15_v5 = vld [vmem:[%s240_s0] sm:$0xff] }
   0x3   :  { %v153_v6 = vpack.c.bf16 %v20_v4, %v19_v2  ;;  %146 = vmatprep.mubr.msk.f32.mxu0 %vm28_vm0, %v15_v5 }
   0x4   :  { %8 = vsyncpa [#allocation3], 0  ;;  %150 = vmatprep.subr.bf16.mxu0 %v149_v3  ;;  %v16_v7 = vld [vmem:[%s240_s0 + $0x8] sm:$0xff]  ;;  %v129_v8 = vld [vmem:[%s242_s2] ss:$0 sm:$0xff]  ;;  %s184_s1 = smov [#allocation2]  }
   0x5   :  { %152 = vmatpush3.bf16.msra.mxu0 %v149_v3  ;;  %s118_s26 = sshll.u32 %s184_s1, 4  ;;  %vm110_vm1 = vcmask 130048   ;;  %s119_s26 = int_to_ptr.vmem [resolvable:$true] %s118_s26 }
   0x6   :  { %154 = vmatprep.subr.bf16.mxu0 %v153_v6  ;;  %s160_s27 = scalar_lea.vmem %s119_s26, 256  ;;  %p165_p1 = scmp.lt.s32.totalorder %s119_s26, %s119_s26 }
   0x7   :  { %p161_p0 = scmp.ne.s32.totalorder %s119_s26, %s160_s27  ;;  %p166_p2 = scmp.lt.s32.totalorder %s160_s27, %s160_s27 }
   0x9   :  { %156 = vmatpush3.bf16.msra.mxu0 %v153_v6  ;;  %p167_p3 = por %p166_p2, %p165_p1 }
   0xb   :  { %p168_p4 = pnand %p167_p3, %p161_p0 }
   0xc   :  { %147 = vmatmul.mubr.msk.f32.vlgmr.msra.gmra.mrb[0].mxu0 %vm28_vm0, %v16_v7 }
  0xdf   :  { %v148_v9 = vpop.f32.mrb[0].mxu0 }
  0xe0   :  { %v107_v10 = vadd.f32 %v148_v9, %v129_v8  ;;  %v101_v11 = vpop.f32.mrb[1].mxu0 }
  0xe1   :  { %v102_v12 = vadd.f32 %v129_v8, %v101_v11 }
  0xe2   :  { %112 = vst.msk [vmem:[#allocation2 + $0x8] sm:$0xff] %vm110_vm1, %v107_v10 }
  0xe3   :  { %111 = vst.msk [vmem:[#allocation2] sm:$0xff] %vm110_vm1, %v102_v12 }
  0xe4   :  { %171 = shalt.err (!%p168_p4)
}
  0xe5   :  { %s172_s2 = scalar_lea.hbm %s243_s3, 256 }
  0xe6   :  { %p173_p5 = scmp.ne.s32.totalorder %s243_s3, %s172_s2  ;;  %p176_p6 = scmp.lt.u32.totalorder %s172_s2, %s243_s3 }
  0xe8   :  { %p178_p7 = pnand %p176_p6, %p173_p5 }
  0xea   :  { %181 = shalt.err (!%p178_p7)
}
  0xeb   :  { %s185_s6 = smov 128   ;;  %s186_s7 = smov 8  }
  0xec   :  { %124 = dma.vmem_to_hbm [thread:$0]  %s119_s26, 256, %s243_s3, [#allocation3], %s185_s6, %s185_s6, %s186_s7  }
  0xed   :  { %182 = dma.done.wait [#allocation3], 256  }
  0xee   :  { %183 = vsyncadd [#allocation3], 4294967040 }
  0xef   :  { %128 = vsyncpa [#allocation3], 1 }

</bundles_post_ra>
